<compile_context>
chip_gen: v6e
topology: v6e:2x2x1
jax: 0.10.0
libtpu: 0.0.40
codegen_flags: <defaults>
</compile_context>

<pallas_src>
import functools

import jax
import jax.numpy as jnp
from jax.experimental import pallas as pl
from jax.experimental.pallas import tpu as pltpu


def _img_embed_ln_kernel(x_ref, wT_ref, lb_ref, add_ref, g_ref, b_ref, o_ref,
                         *, eps, inv_h):
    """One row-tile of: LayerNorm(x @ W^T + b_lin + (pos_emb + tok_emb))."""
    # x_ref:   (tile_rows, K)  image features
    # wT_ref:  (K, H)          linear weight (transposed), f32, VMEM-resident
    # lb_ref:  (1, H)          linear bias, f32
    # add_ref: (tile_rows, H)  pre-gathered position + token-type embeddings, f32
    # g_ref:   (1, H)          LayerNorm gamma, f32
    # b_ref:   (1, H)          LayerNorm beta, f32
    h = jnp.dot(x_ref[...], wT_ref[...], preferred_element_type=jnp.float32)
    h = h + lb_ref[...] + add_ref[...]

    # BERT LayerNorm over the hidden (lane) axis; 1/H folded into constants.
    mean = jnp.sum(h, axis=-1, keepdims=True) * inv_h
    d = h - mean
    var = jnp.sum(d * d, axis=-1, keepdims=True) * inv_h
    y = d * jax.lax.rsqrt(var + eps)
    o_ref[...] = (g_ref[...] * y + b_ref[...]).astype(o_ref.dtype)


def _round_up(a, m):
    return ((a + m - 1) // m) * m


def image_bert_embeddings(input_imgs, img_pos, token_type_ids,
                          lin_weight, lin_bias,
                          pos_table, tok_table,
                          ln_weight, ln_bias,
                          *, eps=1e-5, use_img_position=True,
                          max_tile_rows=512):
    """Forward pass of ImageBertEmbeddings (dropout in eval mode == identity).

    input_imgs:     (B, N, K)  image features
    img_pos:        (B, N)     int32 position ids
    token_type_ids: (B, N)     int32 segment ids
    lin_weight:     (H, K)     nn.Linear weight (PyTorch layout)
    lin_bias:       (H,)
    pos_table:      (P, H)     position-embedding table
    tok_table:      (T, H)     token-type-embedding table
    ln_weight/bias: (H,)       LayerNorm affine params
    """
    B, N, K = input_imgs.shape
    H = lin_weight.shape[0]
    rows = B * N

    # Host-side embedding gathers; fuse their sum into one additive operand.
    add = jnp.take(tok_table, token_type_ids.reshape(-1), axis=0)
    if use_img_position:
        add = add + jnp.take(pos_table, img_pos.reshape(-1), axis=0)
    add = add.astype(jnp.float32)                          # (rows, H)

    x2 = input_imgs.reshape(rows, K)
    # Pre-cast params to f32 on the host (no per-tile casts in the kernel body).
    wT = lin_weight.astype(jnp.float32).T                  # (K, H)
    lb = lin_bias.astype(jnp.float32).reshape(1, H)
    g = ln_weight.astype(jnp.float32).reshape(1, H)
    b = ln_bias.astype(jnp.float32).reshape(1, H)

    # ---- Tile sizing: big row tiles (mem-bound), bounded by a VMEM budget ----
    tile_rows = min(max_tile_rows, _round_up(rows, 8))
    tile_rows = _round_up(tile_rows, 8)

    def _io_bytes(t):  # double-buffered streamed operands per tile (f32)
        return 2 * 4 * t * (K + 2 * H)       # x tile + add tile + out tile

    io_budget = 20 << 20                      # keep well under v5e's 16+ MiB-ish / v7x 64 MiB
    while tile_rows > 8 and _io_bytes(tile_rows) > io_budget:
        tile_rows = max(8, _round_up(tile_rows // 2, 8))

    resident_bytes = 4 * (K * H + 3 * H)      # weight + 3 (1, H) rows, f32
    vmem_limit = int(min(48 << 20,
                         max(2 * (_io_bytes(tile_rows) + resident_bytes),
                             16 << 20)))

    grid = (pl.cdiv(rows, tile_rows),)        # partial last tile handled by masking

    kernel = functools.partial(_img_embed_ln_kernel,
                               eps=float(eps), inv_h=1.0 / float(H))

    out = pl.pallas_call(
        kernel,
        out_shape=jax.ShapeDtypeStruct((rows, H), input_imgs.dtype),
        grid_spec=pltpu.PrefetchScalarGridSpec(
            num_scalar_prefetch=0,
            grid=grid,
            in_specs=[
                pl.BlockSpec((tile_rows, K), lambda i: (i, 0)),   # image features
                pl.BlockSpec((K, H), lambda i: (0, 0)),           # linear weight (resident)
                pl.BlockSpec((1, H), lambda i: (0, 0)),           # linear bias   (resident)
                pl.BlockSpec((tile_rows, H), lambda i: (i, 0)),   # pos+tok embeddings
                pl.BlockSpec((1, H), lambda i: (0, 0)),           # LN gamma      (resident)
                pl.BlockSpec((1, H), lambda i: (0, 0)),           # LN beta       (resident)
            ],
            out_specs=pl.BlockSpec((tile_rows, H), lambda i: (i, 0)),
        ),
        compiler_params=pltpu.CompilerParams(
            dimension_semantics=("parallel",),
            vmem_limit_bytes=vmem_limit,
        ),
    )(x2, wT, lb, add, g, b)

    # TODO(synk): nn.Dropout is identity at inference; train-mode masking would
    # use pltpu.prng_seed / pltpu.prng_random_bits inside the kernel.
    return out.reshape(B, N, H)


if __name__ == "__main__":
    batch, seq = 2, 8                  # 8 image regions per sample
    img_hidden_sz, hidden = 64, 128    # hidden kept a multiple of 128 (lane-dense stores)

    key = jax.random.PRNGKey(0)
    k1, k2, k3, k4, k5, k6, k7 = jax.random.split(key, 7)

    input_imgs = jax.random.normal(k1, (batch, seq, img_hidden_sz), dtype=jnp.float32)
    img_pos = jnp.broadcast_to(jnp.arange(seq, dtype=jnp.int32), (batch, seq))
    token_type_ids = jnp.ones((batch, seq), dtype=jnp.int32)

    lin_weight = 0.05 * jax.random.normal(k2, (hidden, img_hidden_sz), dtype=jnp.float32)
    lin_bias = 0.05 * jax.random.normal(k3, (hidden,), dtype=jnp.float32)
    pos_table = 0.02 * jax.random.normal(k4, (16, hidden), dtype=jnp.float32)
    tok_table = 0.02 * jax.random.normal(k5, (2, hidden), dtype=jnp.float32)
    ln_weight = 1.0 + 0.1 * jax.random.normal(k6, (hidden,), dtype=jnp.float32)
    ln_bias = 0.1 * jax.random.normal(k7, (hidden,), dtype=jnp.float32)

    y = image_bert_embeddings(input_imgs, img_pos, token_type_ids,
                              lin_weight, lin_bias, pos_table, tok_table,
                              ln_weight, ln_bias,
                              eps=1e-5, use_img_position=True)
    y = jax.block_until_ready(y)

    # Plain-JAX reference (same math as the PyTorch module, dropout in eval mode).
    h = jnp.einsum("bnk,hk->bnh", input_imgs, lin_weight,
                   precision=jax.lax.Precision.HIGHEST) + lin_bias
    h = h + pos_table[img_pos] + tok_table[token_type_ids]
    u = jnp.mean(h, axis=-1, keepdims=True)
    s = jnp.mean((h - u) ** 2, axis=-1, keepdims=True)
    ref = ln_weight * ((h - u) / jnp.sqrt(s + 1e-5)) + ln_bias

    assert y.shape == ref.shape and y.dtype == ref.dtype
    # Tolerance covers possible differences in f32 matmul pass counts between
    # the in-kernel MXU dot and the XLA reference einsum.
    assert jnp.allclose(y, ref, atol=1e-2, rtol=1e-2), "mismatch vs reference"

    print("KERNEL_OK")
</pallas_src>

<mosaic_0001>
module attributes {stable_mosaic.version = 11 : i64} {
  func.func @_img_embed_ln_kernel(%arg0: i32, %arg1: memref<16x64xf32, #tpu.memory_space<vmem>>, %arg2: memref<64x128xf32, #tpu.memory_space<vmem>>, %arg3: memref<1x128xf32, #tpu.memory_space<vmem>>, %arg4: memref<16x128xf32, #tpu.memory_space<vmem>>, %arg5: memref<1x128xf32, #tpu.memory_space<vmem>>, %arg6: memref<1x128xf32, #tpu.memory_space<vmem>>, %arg7: memref<16x128xf32, #tpu.memory_space<vmem>>) attributes {dimension_semantics = [#tpu.dimension_semantics<parallel>], iteration_bounds = array<i64: 1>, scalar_prefetch = 0 : i64, scratch_operands = 0 : i64, tpu.core_type = #tpu.core_type<tc>, window_params = [{transform_indices = @transform_0, window_bounds = array<i64: 16, 64>}, {pipeline_mode = #tpu.pipeline_mode<synchronous>, transform_indices = @transform_1, window_bounds = array<i64: 64, 128>}, {pipeline_mode = #tpu.pipeline_mode<synchronous>, transform_indices = @transform_2, window_bounds = array<i64: 1, 128>}, {transform_indices = @transform_3, window_bounds = array<i64: 16, 128>}, {pipeline_mode = #tpu.pipeline_mode<synchronous>, transform_indices = @transform_4, window_bounds = array<i64: 1, 128>}, {pipeline_mode = #tpu.pipeline_mode<synchronous>, transform_indices = @transform_5, window_bounds = array<i64: 1, 128>}, {transform_indices = @transform_6, window_bounds = array<i64: 16, 128>}]} {
    %c0 = arith.constant 0 : index
    %c0_0 = arith.constant 0 : index
    %0 = vector.load %arg1[%c0, %c0_0] : memref<16x64xf32, #tpu.memory_space<vmem>>, vector<16x64xf32>
    %c0_1 = arith.constant 0 : index
    %c0_2 = arith.constant 0 : index
    %1 = vector.load %arg2[%c0_1, %c0_2] : memref<64x128xf32, #tpu.memory_space<vmem>>, vector<64x128xf32>
    %cst = arith.constant dense<0.000000e+00> : vector<16x128xf32>
    %2 = tpu.matmul %0, %1, %cst {dimension_numbers = #tpu.dot_dimension_numbers<[1], [0], [0], [1], [0, 0, 1, 1], [], []>} : vector<16x64xf32>, vector<64x128xf32>, vector<16x128xf32> -> vector<16x128xf32>
    %c0_3 = arith.constant 0 : index
    %c0_4 = arith.constant 0 : index
    %3 = vector.load %arg3[%c0_3, %c0_4] : memref<1x128xf32, #tpu.memory_space<vmem>>, vector<1x128xf32>
    %4 = vector.broadcast %3 : vector<1x128xf32> to vector<16x128xf32>
    %5 = arith.addf %2, %4 : vector<16x128xf32>
    %c0_5 = arith.constant 0 : index
    %c0_6 = arith.constant 0 : index
    %6 = vector.load %arg4[%c0_5, %c0_6] : memref<16x128xf32, #tpu.memory_space<vmem>>, vector<16x128xf32>
    %7 = arith.addf %5, %6 : vector<16x128xf32>
    %cst_7 = arith.constant dense<0.000000e+00> : vector<16xf32>
    %8 = vector.multi_reduction <add>, %7, %cst_7 [1] : vector<16x128xf32> to vector<16xf32>
    %9 = vector.shape_cast %8 : vector<16xf32> to vector<16x1xf32>
    %cst_8 = arith.constant 7.812500e-03 : f32
    %10 = vector.broadcast %cst_8 : f32 to vector<16x1xf32>
    %11 = arith.mulf %9, %10 : vector<16x1xf32>
    %12 = vector.broadcast %11 : vector<16x1xf32> to vector<16x128xf32>
    %13 = arith.subf %7, %12 : vector<16x128xf32>
    %14 = arith.mulf %13, %13 : vector<16x128xf32>
    %cst_9 = arith.constant dense<0.000000e+00> : vector<16xf32>
    %15 = vector.multi_reduction <add>, %14, %cst_9 [1] : vector<16x128xf32> to vector<16xf32>
    %16 = vector.shape_cast %15 : vector<16xf32> to vector<16x1xf32>
    %cst_10 = arith.constant 7.812500e-03 : f32
    %17 = vector.broadcast %cst_10 : f32 to vector<16x1xf32>
    %18 = arith.mulf %16, %17 : vector<16x1xf32>
    %cst_11 = arith.constant 9.99999974E-6 : f32
    %19 = vector.broadcast %cst_11 : f32 to vector<16x1xf32>
    %20 = arith.addf %18, %19 : vector<16x1xf32>
    %21 = math.rsqrt %20 : vector<16x1xf32>
    %22 = vector.broadcast %21 : vector<16x1xf32> to vector<16x128xf32>
    %23 = arith.mulf %13, %22 : vector<16x128xf32>
    %c0_12 = arith.constant 0 : index
    %c0_13 = arith.constant 0 : index
    %24 = vector.load %arg5[%c0_12, %c0_13] : memref<1x128xf32, #tpu.memory_space<vmem>>, vector<1x128xf32>
    %25 = vector.broadcast %24 : vector<1x128xf32> to vector<16x128xf32>
    %26 = arith.mulf %25, %23 : vector<16x128xf32>
    %c0_14 = arith.constant 0 : index
    %c0_15 = arith.constant 0 : index
    %27 = vector.load %arg6[%c0_14, %c0_15] : memref<1x128xf32, #tpu.memory_space<vmem>>, vector<1x128xf32>
    %28 = vector.broadcast %27 : vector<1x128xf32> to vector<16x128xf32>
    %29 = arith.addf %26, %28 : vector<16x128xf32>
    %c0_16 = arith.constant 0 : index
    %c0_17 = arith.constant 0 : index
    %30 = vector.load %arg7[%c0_16, %c0_17] : memref<16x128xf32, #tpu.memory_space<vmem>>, vector<16x128xf32>
    tpu.vector_store %arg7[%c0_16, %c0_17], %29 {strides = array<i32>} : memref<16x128xf32, #tpu.memory_space<vmem>>, vector<16x128xf32>,
    return
  }
  func.func @transform_0(%arg0: i32) -> (i32, i32) {
    %c0_i32 = arith.constant 0 : i32
    %c0_i32_0 = arith.constant 0 : i32
    return %arg0, %c0_i32 : i32, i32
  }
  func.func @transform_1(%arg0: i32) -> (i32, i32) {
    %c0_i32 = arith.constant 0 : i32
    %c0_i32_0 = arith.constant 0 : i32
    %c0_i32_1 = arith.constant 0 : i32
    return %c0_i32, %c0_i32_0 : i32, i32
  }
  func.func @transform_2(%arg0: i32) -> (i32, i32) {
    %c0_i32 = arith.constant 0 : i32
    %c0_i32_0 = arith.constant 0 : i32
    %c0_i32_1 = arith.constant 0 : i32
    return %c0_i32, %c0_i32_0 : i32, i32
  }
  func.func @transform_3(%arg0: i32) -> (i32, i32) {
    %c0_i32 = arith.constant 0 : i32
    %c0_i32_0 = arith.constant 0 : i32
    return %arg0, %c0_i32 : i32, i32
  }
  func.func @transform_4(%arg0: i32) -> (i32, i32) {
    %c0_i32 = arith.constant 0 : i32
    %c0_i32_0 = arith.constant 0 : i32
    %c0_i32_1 = arith.constant 0 : i32
    return %c0_i32, %c0_i32_0 : i32, i32
  }
  func.func @transform_5(%arg0: i32) -> (i32, i32) {
    %c0_i32 = arith.constant 0 : i32
    %c0_i32_0 = arith.constant 0 : i32
    %c0_i32_1 = arith.constant 0 : i32
    return %c0_i32, %c0_i32_0 : i32, i32
  }
  func.func @transform_6(%arg0: i32) -> (i32, i32) {
    %c0_i32 = arith.constant 0 : i32
    %c0_i32_0 = arith.constant 0 : i32
    return %arg0, %c0_i32 : i32, i32
  }
}

</mosaic_0001>

<bundles_post_ra>
// kernel: tpu_custom_call.1
= control target key start
LH: loop header
LB: loop body
LE: loop exit
PB: predicated region body
PF: predicated region fallthrough
CT: control target
= control target key end

     0   :  { %11 = vsyncpa [#allocation3], 0  ;;  %s434_s0 = inlined_call_operand.hbm [shape: f32[16,64], index: 0, kind: input, shape index: {}]   ;;  %s435_s1 = inlined_call_operand.hbm [shape: f32[64,128], index: 1, kind: input, shape index: {}]   ;;  %s436_s2 = inlined_call_operand.vmem [shape: f32[1,128], index: 2, kind: input, shape index: {}]   ;;  %s437_s3 = inlined_call_operand.hbm [shape: f32[16,128], index: 3, kind: input, shape index: {}]   ;;  %s438_s4 = inlined_call_operand.vmem [shape: f32[1,128], index: 4, kind: input, shape index: {}]   ;;  %s439_s5 = inlined_call_operand.vmem [shape: f32[1,128], index: 5, kind: input, shape index: {}]   ;;  %s440_s6 = inlined_call_operand.hbm [shape: f32[16,128], index: 6, kind: output, shape index: {}]  }
   0x1   :  { %12 = vsyncpa [#allocation6], 0 }
   0x2   :  { %13 = vsyncpa [#allocation4], 0  ;;  %s358_s21 = smov [#allocation5]   ;;  %s359_s23 = smov [#allocation2]  }
   0x3   :  { %s31_s22 = sshll.u32 %s358_s21, 4  ;;  %s19_s24 = sshll.u32 %s359_s23, 4  ;;  %s32_s22 = int_to_ptr.vmem [resolvable:$true] %s31_s22  ;;  %s20_s24 = int_to_ptr.vmem [resolvable:$true] %s19_s24 }
   0x4   :  { %s280_s25 = scalar_lea.vmem %s32_s22, 1024  ;;  %p285_p1 = scmp.lt.s32.totalorder %s32_s22, %s32_s22 }
   0x5   :  { %p281_p0 = scmp.ne.s32.totalorder %s32_s22, %s280_s25  ;;  %p286_p2 = scmp.lt.s32.totalorder %s280_s25, %s280_s25 }
   0x7   :  { %p287_p3 = por %p286_p2, %p285_p1 }
   0x9   :  { %p288_p4 = pnand %p287_p3, %p281_p0 }
   0xb   :  { %291 = shalt.err (!%p288_p4)
}
   0xc   :  { %s360_s26 = smov 128   ;;  %s361_s27 = smov 8  }
   0xd   :  { %37 = dma.hbm_to_vmem [thread:$0]  %s435_s1, 1024, %s32_s22, [#allocation6], %s360_s26, %s360_s26, %s361_s27  }
   0xe   :  { %s300_s30 = scalar_lea.vmem %s20_s24, 256  ;;  %p305_p6 = scmp.lt.s32.totalorder %s20_s24, %s20_s24 }
   0xf   :  { %p301_p5 = scmp.ne.s32.totalorder %s20_s24, %s300_s30  ;;  %p306_p7 = scmp.lt.s32.totalorder %s300_s30, %s300_s30 }
  0x11   :  { %p307_p8 = por %p306_p7, %p305_p6 }
  0x13   :  { %p308_p9 = pnand %p307_p8, %p301_p5 }
  0x15   :  { %311 = shalt.err (!%p308_p9)
}
  0x16   :  { %25 = dma.hbm_to_vmem [thread:$0]  %s434_s0, 256, %s20_s24, [#allocation3], %s360_s26, %s360_s26, %s361_s27  }
  0x17   :  { %s362_s9 = smov [#allocation7]  }
  0x18   :  { %s45_s10 = sshll.u32 %s362_s9, 4  ;;  %s46_s10 = int_to_ptr.vmem [resolvable:$true] %s45_s10 }
  0x19   :  { %s320_s11 = scalar_lea.vmem %s46_s10, 256  ;;  %p325_p11 = scmp.lt.s32.totalorder %s46_s10, %s46_s10 }
  0x1a   :  { %p321_p10 = scmp.ne.s32.totalorder %s46_s10, %s320_s11  ;;  %p326_p12 = scmp.lt.s32.totalorder %s320_s11, %s320_s11 }
  0x1c   :  { %p327_p13 = por %p326_p12, %p325_p11 }
  0x1e   :  { %p328_p0 = pnand %p327_p13, %p321_p10 }
  0x20   :  { %331 = shalt.err (!%p328_p0)
}
  0x21   :  { %51 = dma.hbm_to_vmem [thread:$0]  %s437_s3, 256, %s46_s10, [#allocation6], %s360_s26, %s360_s26, %s361_s27  }
  0x22   :  { %352 = dma.done.wait [#allocation3], 256  }
  0x23   :  { %353 = vsyncadd [#allocation3], 4294967040 }
  0x24   :  { %354 = dma.done.wait [#allocation6], 1280  }
  0x25   :  { %355 = vsyncadd [#allocation6], 4294966016  ;;  %v74_v0 = vld [vmem:[#allocation5 + $0x38] sm:$0xff]  ;;  %v73_v1 = vld [vmem:[#allocation5 + $0x30] sm:$0xff]  ;;  %vm82_vm0 = vcmask 523264   ;;  %s363_s16 = smov [#allocation8]  }
  0x26   :  { %243 = vmatprep.subr.mxu0 %v74_v0  ;;  %v72_v2 = vld [vmem:[#allocation5 + $0x28] sm:$0xff]  ;;  %v65_v3 = vld [vmem:[#allocation2] sm:$0xff]  ;;  %v71_v4 = vld [vmem:[#allocation5 + $0x20] sm:$0xff]  ;;  %s215_s17 = sshll.u32 %s363_s16, 4  ;;  %s216_s17 = int_to_ptr.vmem [resolvable:$true] %s215_s17 }
  0x27   :  { %244 = vmatpush3.msra.mxu0 %v74_v0  ;;  %259 = vmatprep.mubr.msk.f32.mxu0 %vm82_vm0, %v65_v3  ;;  %v70_v5 = vld [vmem:[#allocation5 + $0x18] sm:$0xff]  ;;  %v69_v6 = vld [vmem:[#allocation5 + $0x10] sm:$0xff]  ;;  %v68_v7 = vld [vmem:[#allocation5 + $0x8] sm:$0xff]  ;;  %s332_s18 = scalar_lea.vmem %s216_s17, 256  ;;  %p337_p2 = scmp.lt.s32.totalorder %s216_s17, %s216_s17 }
  0x28   :  { %245 = vmatprep.subr.mxu0 %v73_v1  ;;  %v67_v8 = vld [vmem:[#allocation5] sm:$0xff]  ;;  %v66_v9 = vld [vmem:[#allocation2 + $0x8] sm:$0xff]  ;;  %v228_v11 = vld [vmem:[%s436_s2] ss:$0 sm:$0xff]  ;;  %p333_p1 = scmp.ne.s32.totalorder %s216_s17, %s332_s18  ;;  %p338_p3 = scmp.lt.s32.totalorder %s332_s18, %s332_s18 }
  0x29   :  { %246 = vmatpush3.msra.mxu0 %v73_v1  ;;  %v164_v13 = vld [vmem:[#allocation7] sm:$0xff]  ;;  %v165_v17 = vld [vmem:[#allocation7 + $0x8] sm:$0xff]  ;;  %v231_v34 = vld [vmem:[%s438_s4] ss:$0 sm:$0xff] }
  0x2a   :  { %247 = vmatprep.subr.mxu0 %v72_v2  ;;  %v232_v36 = vld [vmem:[%s439_s5] ss:$0 sm:$0xff]  ;;  %p339_p4 = por %p338_p3, %p337_p2 }
  0x2b   :  { %248 = vmatpush3.msra.mxu0 %v72_v2 }
  0x2c   :  { %249 = vmatprep.subr.mxu0 %v71_v4  ;;  %p340_p5 = pnand %p339_p4, %p333_p1 }
  0x2d   :  { %250 = vmatpush3.msra.mxu0 %v71_v4 }
  0x2e   :  { %251 = vmatprep.subr.mxu0 %v70_v5 }
  0x2f   :  { %252 = vmatpush3.msra.mxu0 %v70_v5 }
  0x30   :  { %253 = vmatprep.subr.mxu0 %v69_v6 }
  0x31   :  { %254 = vmatpush3.msra.mxu0 %v69_v6 }
  0x32   :  { %255 = vmatprep.subr.mxu0 %v68_v7 }
  0x33   :  { %256 = vmatpush3.msra.mxu0 %v68_v7 }
  0x34   :  { %257 = vmatprep.subr.mxu0 %v67_v8 }
  0x35   :  { %258 = vmatpush3.msra.mxu0 %v67_v8 }
  0x36   :  { %260 = vmatmul.mubr.msk.f32.vlgmr.msra.gmra.mxu0 %vm82_vm0, %v66_v9 }
  0xf6   :  { %v261_v10 = vpop.f32.mrf.mxu0 }
  0xf7   :  { %v161_v15 = vadd.f32 %v261_v10, %v228_v11 }
  0xf8   :  { %v155_v12 = vpop.f32.mrf.mxu0 }
  0xf9   :  { %v156_v14 = vadd.f32 %v228_v11, %v155_v12  ;;  %v167_v18 = vadd.f32 %v165_v17, %v161_v15 }
  0xfb   :  { %v166_v16 = vadd.f32 %v164_v13, %v156_v14 }
  0xfd   :  { %168 = vadd.xlane.f32.xlu0 %v166_v16 }
 0x101   :  { %170 = vadd.xlane.f32.xlu0 %v167_v18 }
 0x186   :  { %v169_v19 = vpop.xlane.xlu0 %168 }
 0x187   :  { %v172_v20 = vmul.f32 0.0078125, %v169_v19 }
 0x189   :  { %v174_v21 = vsub.f32 %v166_v16, %v172_v20 }
 0x18a   :  { %v171_v22 = vpop.xlane.xlu0 %170 }
 0x18b   :  { %v173_v23 = vmul.f32 0.0078125, %v171_v22  ;;  %v176_v24 = vmul.f32 %v174_v21, %v174_v21 }
 0x18d   :  { %v175_v25 = vsub.f32 %v167_v18, %v173_v23  ;;  %178 = vadd.xlane.f32.xlu1 %v176_v24 }
 0x18f   :  { %v177_v26 = vmul.f32 %v175_v25, %v175_v25 }
 0x191   :  { %180 = vadd.xlane.f32.xlu1 %v177_v26 }
 0x216   :  { %v179_v27 = vpop.xlane.xlu1 %178 }
 0x217   :  { %v182_v28 = vmul.f32 0.0078125, %v179_v27 }
 0x219   :  { %v184_v29 = vadd.f32 1e-05, %v182_v28 }
 0x21a   :  { %v181_v30 = vpop.xlane.xlu1 %180 }
 0x21b   :  { %268 = vrsqrt.f32 %v184_v29  ;;  %v183_v31 = vmul.f32 0.0078125, %v181_v30 }
 0x21d   :  { %v185_v32 = vadd.f32 1e-05, %v183_v31 }
 0x21f   :  { %270 = vrsqrt.f32 %v185_v32 }
 0x228   :  { %v269_v33 = vpop.eup %268 }
 0x229   :  { %v188_v35 = vmul.f32 %v269_v33, %v174_v21 }
 0x22b   :  { %v197_v37 = vmul.f32 %v231_v34, %v188_v35 }
 0x22c   :  { %v271_v38 = vpop.eup %270 }
 0x22d   :  { %v189_v39 = vmul.f32 %v271_v38, %v175_v25  ;;  %v206_v40 = vadd.f32 %v232_v36, %v197_v37 }
 0x22f   :  { %v198_v41 = vmul.f32 %v231_v34, %v189_v39  ;;  %208 = vst [vmem:[#allocation8] sm:$0xff] %v206_v40 }
 0x231   :  { %v207_v42 = vadd.f32 %v232_v36, %v198_v41 }
 0x233   :  { %209 = vst [vmem:[#allocation8 + $0x8] sm:$0xff] %v207_v42 }
 0x234   :  { %343 = shalt.err (!%p340_p5)
}
 0x235   :  { %221 = dma.vmem_to_hbm [thread:$0]  %s216_s17, 256, %s440_s6, [#allocation4], %s360_s26, %s360_s26, %s361_s27  }
 0x236   :  { %356 = dma.done.wait [#allocation4], 256  }
 0x237   :  { %357 = vsyncadd [#allocation4], 4294967040 }
 0x238   :  { %225 = vsyncpa [#allocation3], 1 }
 0x239   :  { %226 = vsyncpa [#allocation6], 1 }
 0x23a   :  { %227 = vsyncpa [#allocation4], 1 }

</bundles_post_ra>
